<compile_context>
chip_gen: v6e
topology: v6e:2x2x1
jax: 0.10.0
libtpu: 0.0.40
codegen_flags: <defaults>
</compile_context>

<pallas_src>
import functools

import jax
import jax.numpy as jnp
from jax.experimental import pallas as pl
from jax.experimental.pallas import tpu as pltpu


def _round_up(x: int, m: int) -> int:
    return ((x + m - 1) // m) * m


def _chip_caps():
    """Best-effort hardware query; conservative fallbacks if unavailable."""
    vmem_bytes = 64 << 20        # v7x per-TC capacity (smallest of v5e/v6e/v7x)
    bf16_vpu = True              # v6e/v7x have bf16 VPU/EUP
    big_mxu = True               # v6e/v7x MXUs are 256x256
    try:
        info = pltpu.get_tpu_info()
        vmem_bytes = int(getattr(info, "vmem_capacity_bytes", vmem_bytes))
    except Exception:
        pass
    try:
        kind = jax.devices()[0].device_kind.lower()
        if any(t in kind for t in ("v2", "v3", "v4", "v5")):
            bf16_vpu = False     # no bf16 VPU/EUP before v6
            big_mxu = False      # v5e MXU is 128x128
    except Exception:
        pass
    return vmem_bytes, bf16_vpu, big_mxu


def _feat_pad(n: int, big_mxu: bool) -> int:
    # 256-aligned on 256x256-MXU chips when the dim is big enough to amortize
    # the extra padding; otherwise lane-dense 128.
    align = 256 if (big_mxu and n >= 256) else 128
    return _round_up(n, align)


# --------------------------------------------------------------------------
# Kernels
# --------------------------------------------------------------------------
def _mlp_resident_kernel(x_ref, w1_ref, b1_ref, w2_ref, b2_ref, o_ref, *,
                         bf16_epilogue):
    # layer 1: x @ W1 (MXU, f32 accumulate) + bias (VPU row broadcast) + tanh.
    h = jnp.dot(x_ref[...], w1_ref[...], preferred_element_type=jnp.float32)
    h = h + b1_ref[...]
    if bf16_epilogue:
        h = jnp.tanh(h.astype(jnp.bfloat16))          # bf16 EUP (v6e/v7x)
    else:
        h = jnp.tanh(h).astype(w2_ref.dtype)          # f32 EUP (v5e / f32 path)
    # layer 2: h @ W2 + bias.
    out = jnp.dot(h, w2_ref[...], preferred_element_type=jnp.float32)
    o_ref[...] = (out + b2_ref[...]).astype(o_ref.dtype)


def _mlp_htiled_kernel(x_ref, w1_ref, b1_ref, w2_ref, b2_ref, o_ref, acc_ref, *,
                       bf16_epilogue):
    # Streaming reduction over H: per H-tile compute tanh(x@W1_tile + b1_tile)
    # (exact — tanh is elementwise over H) and accumulate into a (tb, Out) f32
    # scratch; add b2 and store on the last H step.
    hi = pl.program_id(1)

    @pl.when(hi == 0)
    def _():
        acc_ref[...] = jnp.zeros_like(acc_ref)

    h = jnp.dot(x_ref[...], w1_ref[...], preferred_element_type=jnp.float32)
    h = h + b1_ref[...]
    if bf16_epilogue:
        h = jnp.tanh(h.astype(jnp.bfloat16))
    else:
        h = jnp.tanh(h).astype(w2_ref.dtype)
    acc_ref[...] += jnp.dot(h, w2_ref[...], preferred_element_type=jnp.float32)

    @pl.when(hi == pl.num_programs(1) - 1)
    def _():
        o_ref[...] = (acc_ref[...] + b2_ref[...]).astype(o_ref.dtype)


# --------------------------------------------------------------------------
# Parameter packing (done once, outside the per-call forward path)
# --------------------------------------------------------------------------
def pack_mlp_params(w1, b1, w2, b2, *, compute_dtype=jnp.bfloat16):
    """Pad feature dims (lane-dense / MXU-aligned) and cast weights ONCE.

    w1: [In, H], b1: [H] or [1, H], w2: [H, Out], b2: [Out] or [1, Out].
    Zero padding is exact: padded In columns contribute 0 to h, padded H
    columns are tanh(0) = 0 and meet zero rows of W2, padded Out columns are
    sliced off in mlp_forward.
    """
    In, H = w1.shape
    Out = w2.shape[1]
    _, _, big_mxu = _chip_caps()
    cd = jnp.dtype(compute_dtype)
    In_p, H_p, Out_p = (_feat_pad(n, big_mxu) for n in (In, H, Out))
    w1p = jnp.pad(w1, ((0, In_p - In), (0, H_p - H))).astype(cd)
    w2p = jnp.pad(w2, ((0, H_p - H), (0, Out_p - Out))).astype(cd)
    b1p = jnp.pad(b1.reshape(1, -1), ((0, 0), (0, H_p - H))).astype(jnp.float32)
    b2p = jnp.pad(b2.reshape(1, -1), ((0, 0), (0, Out_p - Out))).astype(jnp.float32)
    return w1p, b1p, w2p, b2p


# --------------------------------------------------------------------------
# Forward
# --------------------------------------------------------------------------
@functools.partial(jax.jit,
                   static_argnames=("out_features", "tb", "th", "force_htiled"))
def mlp_forward(x, w1p, b1p, w2p, b2p, out_features, *, tb=None, th=None,
                force_htiled=False):
    """Fused MLP forward with pre-packed params. Returns [B, out_features]."""
    B, In = x.shape
    In_p, H_p = w1p.shape
    Out_p = w2p.shape[1]
    out_dtype = x.dtype
    cd = jnp.dtype(w1p.dtype)
    cd_b = cd.itemsize
    out_b = jnp.dtype(out_dtype).itemsize
    f32_compute = (cd == jnp.dtype(jnp.float32))

    vmem_cap, bf16_vpu, _ = _chip_caps()
    bf16_epilogue = (not f32_compute) and bf16_vpu and cd == jnp.dtype(jnp.bfloat16)

    headroom = 4 << 20                       # compiler-internal scratch margin
    usable = max(16 << 20, vmem_cap - headroom)

    # Single-buffered weight/bias footprint (resident design).
    w_bytes = (In_p * H_p + H_p * Out_p) * cd_b
    bias_bytes = 8 * (H_p + Out_p) * 4       # (1,N) f32 rows pad to 8 sublanes

    use_htiled = bool(force_htiled) or (w_bytes + bias_bytes > int(0.6 * usable))

    # ---------- tile sizing (explicit per-buffer VMEM accounting) ----------
    B_p8 = _round_up(B, 8)
    h_bytes_per_elem = 4 + (2 if bf16_epilogue else cd_b)   # f32 h + cast copy

    if use_htiled:
        if th is None:
            budget = int(0.4 * usable)
            per_col = 2 * (In_p + Out_p) * cd_b + 2 * 8 * 4  # dbl-buf W1/W2/b1
            th = max(128, (budget // max(per_col, 1)) // 128 * 128)
        th = min(H_p, max(128, _round_up(int(th), 128)))
        # largest multiple of 128 <= th that divides H_p (H_p is 128-aligned)
        best, cand = 128, 128
        while cand <= th:
            if H_p % cand == 0:
                best = cand
            cand += 128
        th = best
        fixed = (2 * (In_p + Out_p) * th * cd_b   # double-buffered W1/W2 tiles
                 + 2 * 8 * th * 4                 # double-buffered b1 tile
                 + 8 * Out_p * 4)                 # single-buffered b2
        per_row = (2 * In_p * cd_b                # double-buffered x tile
                   + 2 * Out_p * out_b            # double-buffered out tile
                   + Out_p * 4                    # f32 accumulator scratch
                   + th * h_bytes_per_elem)       # h intermediate
    else:
        th = H_p
        fixed = w_bytes + bias_bytes              # Buffered(1) weights/biases
        per_row = (2 * In_p * cd_b + 2 * Out_p * out_b
                   + Out_p * 4 + H_p * h_bytes_per_elem)

    tb_cap = max(8, ((usable - fixed) // per_row) // 8 * 8)

    if tb is None:
        # Aim for ~4 batch grid steps (DMA/compute overlap + megacore on v7x)
        # without dropping below 32 rows per step.
        tb = max(32, -(-B_p8 // 4))
    tb = max(8, _round_up(min(int(tb), B_p8, tb_cap, 1024), 8))
    B_p = _round_up(B, tb)

    vmem_needed = fixed + tb * per_row
    vmem_limit = int(min(usable, max(vmem_needed + (4 << 20), 32 << 20)))

    # ---------- pad/cast activations only (weights were pre-packed) ----------
    xc = jnp.pad(x, ((0, B_p - B), (0, In_p - In))).astype(cd)

    cost = pl.CostEstimate(
        flops=2 * B_p * (In_p * H_p + H_p * Out_p),
        transcendentals=B_p * H_p,
        bytes_accessed=(B_p * In_p * cd_b
                        + (In_p * H_p + H_p * Out_p) * cd_b
                        + 4 * (H_p + Out_p)
                        + B_p * Out_p * out_b),
    )

    if not use_htiled:
        out_p = pl.pallas_call(
            functools.partial(_mlp_resident_kernel, bf16_epilogue=bf16_epilogue),
            out_shape=jax.ShapeDtypeStruct((B_p, Out_p), out_dtype),
            grid_spec=pltpu.PrefetchScalarGridSpec(
                num_scalar_prefetch=0,
                grid=(B_p // tb,),
                in_specs=[
                    pl.BlockSpec((tb, In_p), lambda i: (i, 0)),
                    pl.BlockSpec((In_p, H_p), lambda i: (0, 0),
                                 pipeline_mode=pl.Buffered(1)),   # resident W1
                    pl.BlockSpec((1, H_p), lambda i: (0, 0),
                                 pipeline_mode=pl.Buffered(1)),   # b1
                    pl.BlockSpec((H_p, Out_p), lambda i: (0, 0),
                                 pipeline_mode=pl.Buffered(1)),   # resident W2
                    pl.BlockSpec((1, Out_p), lambda i: (0, 0),
                                 pipeline_mode=pl.Buffered(1)),   # b2
                ],
                out_specs=pl.BlockSpec((tb, Out_p), lambda i: (i, 0)),
            ),
            compiler_params=pltpu.CompilerParams(
                dimension_semantics=("parallel",),
                vmem_limit_bytes=vmem_limit,
            ),
            cost_estimate=cost,
        )(xc, w1p, b1p, w2p, b2p)
    else:
        out_p = pl.pallas_call(
            functools.partial(_mlp_htiled_kernel, bf16_epilogue=bf16_epilogue),
            out_shape=jax.ShapeDtypeStruct((B_p, Out_p), out_dtype),
            grid_spec=pltpu.PrefetchScalarGridSpec(
                num_scalar_prefetch=0,
                grid=(B_p // tb, H_p // th),
                in_specs=[
                    pl.BlockSpec((tb, In_p), lambda i, h: (i, 0)),   # x tile
                    pl.BlockSpec((In_p, th), lambda i, h: (0, h)),   # W1 stream
                    pl.BlockSpec((1, th), lambda i, h: (0, h)),      # b1 stream
                    pl.BlockSpec((th, Out_p), lambda i, h: (h, 0)),  # W2 stream
                    pl.BlockSpec((1, Out_p), lambda i, h: (0, 0),
                                 pipeline_mode=pl.Buffered(1)),      # b2
                ],
                out_specs=pl.BlockSpec((tb, Out_p), lambda i, h: (i, 0)),
                scratch_shapes=[pltpu.VMEM((tb, Out_p), jnp.float32)],
            ),
            compiler_params=pltpu.CompilerParams(
                dimension_semantics=("parallel", "arbitrary"),
                vmem_limit_bytes=vmem_limit,
            ),
            cost_estimate=cost,
        )(xc, w1p, b1p, w2p, b2p)

    return out_p[:B, :out_features]


def init_mlp_params(key, input_size, hidden_size, output_size,
                    dtype=jnp.float32):
    """Deterministic init mimicking torch.nn.Linear (U(-1/sqrt(fan_in), +))."""
    k1, k2, k3, k4 = jax.random.split(key, 4)
    bound1 = 1.0 / (input_size ** 0.5)
    bound2 = 1.0 / (hidden_size ** 0.5)
    w1 = jax.random.uniform(k1, (input_size, hidden_size), dtype,
                            minval=-bound1, maxval=bound1)
    b1 = jax.random.uniform(k2, (1, hidden_size), dtype,
                            minval=-bound1, maxval=bound1)
    w2 = jax.random.uniform(k3, (hidden_size, output_size), dtype,
                            minval=-bound2, maxval=bound2)
    b2 = jax.random.uniform(k4, (1, output_size), dtype,
                            minval=-bound2, maxval=bound2)
    return w1, b1, w2, b2


if __name__ == "__main__":
    input_size, hidden_size, output_size = 32, 64, 16
    batch = 8

    key = jax.random.PRNGKey(0)
    kx, kp = jax.random.split(key)
    x = jax.random.normal(kx, (batch, input_size), jnp.float32)
    w1, b1, w2, b2 = init_mlp_params(kp, input_size, hidden_size, output_size)

    # f32 reference (original module semantics).
    ref_f32 = jnp.tanh(x @ w1 + b1) @ w2 + b2

    # 1) f32 compute path (resident-weights kernel): tight numerical check.
    p32 = pack_mlp_params(w1, b1, w2, b2, compute_dtype=jnp.float32)
    out_f32 = jax.block_until_ready(mlp_forward(x, *p32, output_size))
    assert out_f32.shape == (batch, output_size)
    assert jnp.allclose(out_f32, ref_f32, atol=1e-5, rtol=1e-5)

    # 2) default bf16 MXU / f32-accumulate path (perf configuration).
    pbf = pack_mlp_params(w1, b1, w2, b2, compute_dtype=jnp.bfloat16)
    out_bf16 = jax.block_until_ready(mlp_forward(x, *pbf, output_size))
    assert out_bf16.shape == (batch, output_size)
    assert jnp.allclose(out_bf16, ref_f32, atol=5e-2, rtol=5e-2)

    # 3) H-tiled streaming-reduction path (used automatically when the weights
    #    would not fit VMEM, e.g. v7x's 64 MiB) exercised explicitly at a
    #    slightly larger shape with 2 H-tiles and a 4-step batch grid.
    In2, H2, Out2, B2 = 256, 512, 128, 256
    kx2, kp2 = jax.random.split(jax.random.PRNGKey(1))
    x2 = jax.random.normal(kx2, (B2, In2), jnp.float32)
    w1b, b1b, w2b, b2b = init_mlp_params(kp2, In2, H2, Out2)
    ref2 = jnp.tanh(x2 @ w1b + b1b) @ w2b + b2b
    p2 = pack_mlp_params(w1b, b1b, w2b, b2b, compute_dtype=jnp.float32)
    out2 = jax.block_until_ready(
        mlp_forward(x2, *p2, Out2, force_htiled=True, th=256))
    assert out2.shape == (B2, Out2)
    assert jnp.allclose(out2, ref2, atol=2e-2, rtol=2e-2)

    print("KERNEL_OK")
</pallas_src>

<mosaic_0001>
module attributes {stable_mosaic.version = 11 : i64} {
  func.func @_mlp_resident_kernel(%arg0: i32, %arg1: memref<8x128xf32, #tpu.memory_space<vmem>>, %arg2: memref<128x128xf32, #tpu.memory_space<vmem>>, %arg3: memref<1x128xf32, #tpu.memory_space<vmem>>, %arg4: memref<128x128xf32, #tpu.memory_space<vmem>>, %arg5: memref<1x128xf32, #tpu.memory_space<vmem>>, %arg6: memref<8x128xf32, #tpu.memory_space<vmem>>) attributes {dimension_semantics = [#tpu.dimension_semantics<parallel>], iteration_bounds = array<i64: 1>, scalar_prefetch = 0 : i64, scratch_operands = 0 : i64, tpu.core_type = #tpu.core_type<tc>, window_params = [{transform_indices = @transform_0, window_bounds = array<i64: 8, 128>}, {pipeline_mode = #tpu.pipeline_mode<synchronous>, transform_indices = @transform_1, window_bounds = array<i64: 128, 128>}, {pipeline_mode = #tpu.pipeline_mode<synchronous>, transform_indices = @transform_2, window_bounds = array<i64: 1, 128>}, {pipeline_mode = #tpu.pipeline_mode<synchronous>, transform_indices = @transform_3, window_bounds = array<i64: 128, 128>}, {pipeline_mode = #tpu.pipeline_mode<synchronous>, transform_indices = @transform_4, window_bounds = array<i64: 1, 128>}, {transform_indices = @transform_5, window_bounds = array<i64: 8, 128>}]} {
    %c0 = arith.constant 0 : index
    %c0_0 = arith.constant 0 : index
    %0 = vector.load %arg1[%c0, %c0_0] : memref<8x128xf32, #tpu.memory_space<vmem>>, vector<8x128xf32>
    %c0_1 = arith.constant 0 : index
    %c0_2 = arith.constant 0 : index
    %1 = vector.load %arg2[%c0_1, %c0_2] : memref<128x128xf32, #tpu.memory_space<vmem>>, vector<128x128xf32>
    %cst = arith.constant dense<0.000000e+00> : vector<8x128xf32>
    %2 = tpu.matmul %0, %1, %cst {dimension_numbers = #tpu.dot_dimension_numbers<[1], [0], [0], [1], [0, 0, 1, 1], [], []>} : vector<8x128xf32>, vector<128x128xf32>, vector<8x128xf32> -> vector<8x128xf32>
    %c0_3 = arith.constant 0 : index
    %c0_4 = arith.constant 0 : index
    %3 = vector.load %arg3[%c0_3, %c0_4] : memref<1x128xf32, #tpu.memory_space<vmem>>, vector<1x128xf32>
    %4 = vector.broadcast %3 : vector<1x128xf32> to vector<8x128xf32>
    %5 = arith.addf %2, %4 : vector<8x128xf32>
    %6 = math.tanh %5 : vector<8x128xf32>
    %c0_5 = arith.constant 0 : index
    %c0_6 = arith.constant 0 : index
    %7 = vector.load %arg4[%c0_5, %c0_6] : memref<128x128xf32, #tpu.memory_space<vmem>>, vector<128x128xf32>
    %cst_7 = arith.constant dense<0.000000e+00> : vector<8x128xf32>
    %8 = tpu.matmul %6, %7, %cst_7 {dimension_numbers = #tpu.dot_dimension_numbers<[1], [0], [0], [1], [0, 0, 1, 1], [], []>} : vector<8x128xf32>, vector<128x128xf32>, vector<8x128xf32> -> vector<8x128xf32>
    %c0_8 = arith.constant 0 : index
    %c0_9 = arith.constant 0 : index
    %9 = vector.load %arg5[%c0_8, %c0_9] : memref<1x128xf32, #tpu.memory_space<vmem>>, vector<1x128xf32>
    %10 = vector.broadcast %9 : vector<1x128xf32> to vector<8x128xf32>
    %11 = arith.addf %8, %10 : vector<8x128xf32>
    %c0_10 = arith.constant 0 : index
    %c0_11 = arith.constant 0 : index
    %12 = vector.load %arg6[%c0_10, %c0_11] : memref<8x128xf32, #tpu.memory_space<vmem>>, vector<8x128xf32>
    tpu.vector_store %arg6[%c0_10, %c0_11], %11 {strides = array<i32>} : memref<8x128xf32, #tpu.memory_space<vmem>>, vector<8x128xf32>,
    return
  }
  func.func @transform_0(%arg0: i32) -> (i32, i32) {
    %c0_i32 = arith.constant 0 : i32
    %c0_i32_0 = arith.constant 0 : i32
    return %arg0, %c0_i32 : i32, i32
  }
  func.func @transform_1(%arg0: i32) -> (i32, i32) {
    %c0_i32 = arith.constant 0 : i32
    %c0_i32_0 = arith.constant 0 : i32
    %c0_i32_1 = arith.constant 0 : i32
    return %c0_i32, %c0_i32_0 : i32, i32
  }
  func.func @transform_2(%arg0: i32) -> (i32, i32) {
    %c0_i32 = arith.constant 0 : i32
    %c0_i32_0 = arith.constant 0 : i32
    %c0_i32_1 = arith.constant 0 : i32
    return %c0_i32, %c0_i32_0 : i32, i32
  }
  func.func @transform_3(%arg0: i32) -> (i32, i32) {
    %c0_i32 = arith.constant 0 : i32
    %c0_i32_0 = arith.constant 0 : i32
    %c0_i32_1 = arith.constant 0 : i32
    return %c0_i32, %c0_i32_0 : i32, i32
  }
  func.func @transform_4(%arg0: i32) -> (i32, i32) {
    %c0_i32 = arith.constant 0 : i32
    %c0_i32_0 = arith.constant 0 : i32
    %c0_i32_1 = arith.constant 0 : i32
    return %c0_i32, %c0_i32_0 : i32, i32
  }
  func.func @transform_5(%arg0: i32) -> (i32, i32) {
    %c0_i32 = arith.constant 0 : i32
    %c0_i32_0 = arith.constant 0 : i32
    return %arg0, %c0_i32 : i32, i32
  }
}

</mosaic_0001>

<bundles_post_ra>
// kernel: mlp_forward.1
= control target key start
LH: loop header
LB: loop body
LE: loop exit
PB: predicated region body
PF: predicated region fallthrough
CT: control target
= control target key end

     0   :  { %10 = vsyncpa [#allocation3], 0  ;;  %s524_s0 = inlined_call_operand.vmem [shape: f32[8,128], index: 0, kind: input, shape index: {}]   ;;  %s525_s1 = inlined_call_operand.hbm [shape: f32[128,128], index: 1, kind: input, shape index: {}]   ;;  %s526_s2 = inlined_call_operand.vmem [shape: f32[1,128], index: 2, kind: input, shape index: {}]   ;;  %s527_s3 = inlined_call_operand.hbm [shape: f32[128,128], index: 3, kind: input, shape index: {}]   ;;  %s528_s4 = inlined_call_operand.vmem [shape: f32[1,128], index: 4, kind: input, shape index: {}]   ;;  %s529_s5 = inlined_call_operand.hbm [shape: f32[8,128], index: 5, kind: output, shape index: {}]  }
   0x1   :  { %11 = vsyncpa [#allocation6], 0 }
   0x2   :  { %12 = vsyncpa [#allocation4], 0  ;;  %s435_s18 = smov [#allocation2]  }
   0x3   :  { %s20_s19 = sshll.u32 %s435_s18, 4  ;;  %s21_s19 = int_to_ptr.vmem [resolvable:$true] %s20_s19 }
   0x4   :  { %s377_s20 = scalar_lea.vmem %s21_s19, 2048  ;;  %p382_p1 = scmp.lt.s32.totalorder %s21_s19, %s21_s19 }
   0x5   :  { %p378_p0 = scmp.ne.s32.totalorder %s21_s19, %s377_s20  ;;  %p383_p2 = scmp.lt.s32.totalorder %s377_s20, %s377_s20 }
   0x7   :  { %p384_p3 = por %p383_p2, %p382_p1 }
   0x9   :  { %p385_p4 = pnand %p384_p3, %p378_p0 }
   0xb   :  { %388 = shalt.err (!%p385_p4)
}
   0xc   :  { %s436_s21 = smov 128   ;;  %s437_s22 = smov 8  }
   0xd   :  { %26 = dma.hbm_to_vmem [thread:$0]  %s525_s1, 2048, %s21_s19, [#allocation3], %s436_s21, %s436_s21, %s437_s22  }
   0xe   :  { %s438_s25 = smov [#allocation5]  }
   0xf   :  { %s34_s26 = sshll.u32 %s438_s25, 4  ;;  %s35_s26 = int_to_ptr.vmem [resolvable:$true] %s34_s26 }
  0x10   :  { %s397_s27 = scalar_lea.vmem %s35_s26, 2048  ;;  %p402_p6 = scmp.lt.s32.totalorder %s35_s26, %s35_s26 }
  0x11   :  { %p398_p5 = scmp.ne.s32.totalorder %s35_s26, %s397_s27  ;;  %p403_p7 = scmp.lt.s32.totalorder %s397_s27, %s397_s27 }
  0x13   :  { %p404_p8 = por %p403_p7, %p402_p6 }
  0x15   :  { %p405_p9 = pnand %p404_p8, %p398_p5 }
  0x17   :  { %408 = shalt.err (!%p405_p9)
}
  0x18   :  { %40 = dma.hbm_to_vmem [thread:$0]  %s527_s3, 2048, %s35_s26, [#allocation6], %s436_s21, %s436_s21, %s437_s22  }
  0x19   :  { %429 = dma.done.wait [#allocation3], 2048  }
  0x1a   :  { %430 = vsyncadd [#allocation3], 4294965248 }
  0x1b   :  { %431 = dma.done.wait [#allocation6], 2048  }
  0x1c   :  { %432 = vsyncadd [#allocation6], 4294965248  ;;  %v439_v0 = vmov 0.0   ;;  %vm440_vm0 = vmmov 0   ;;  %v65_v1 = vld [vmem:[#allocation2 + $0x78] sm:$0xff]  ;;  %v64_v2 = vld [vmem:[#allocation2 + $0x70] sm:$0xff] }
  0x1d   :  { %290 = vmatprep.subr.mxu0 %v439_v0  ;;  %322 = vmatprep.mubr.msk.f32.mxu0 %vm440_vm0, %v439_v0  ;;  %v63_v3 = vld [vmem:[#allocation2 + $0x68] sm:$0xff]  ;;  %v62_v4 = vld [vmem:[#allocation2 + $0x60] sm:$0xff]  ;;  %v159_v5 = vld [vmem:[#allocation5 + $0x78] sm:$0xff]  ;;  %s441_s8 = smov [#allocation7]  }
  0x1e   :  { %325 = vmatprep.subr.mxu1 %v439_v0  ;;  %357 = vmatprep.mubr.msk.f32.mxu1 %vm440_vm0, %v439_v0  ;;  %v61_v6 = vld [vmem:[#allocation2 + $0x58] sm:$0xff]  ;;  %v158_v7 = vld [vmem:[#allocation5 + $0x70] sm:$0xff]  ;;  %v157_v8 = vld [vmem:[#allocation5 + $0x68] sm:$0xff]  ;;  %s244_s9 = sshll.u32 %s441_s8, 4  ;;  %s245_s9 = int_to_ptr.vmem [resolvable:$true] %s244_s9 }
  0x1f   :  { %291 = vmatpush3.msra.mxu0 %v65_v1  ;;  %326 = vmatpush3.msra.mxu1 %v159_v5  ;;  %v60_v9 = vld [vmem:[#allocation2 + $0x50] sm:$0xff]  ;;  %v156_v10 = vld [vmem:[#allocation5 + $0x60] sm:$0xff]  ;;  %v59_v11 = vld [vmem:[#allocation2 + $0x48] sm:$0xff]  ;;  %s409_s10 = scalar_lea.vmem %s245_s9, 128  ;;  %p414_p11 = scmp.lt.s32.totalorder %s245_s9, %s245_s9 }
  0x20   :  { %292 = vmatprep.subr.mxu0 %v439_v0  ;;  %327 = vmatprep.subr.mxu1 %v439_v0  ;;  %v155_v12 = vld [vmem:[#allocation5 + $0x58] sm:$0xff]  ;;  %v58_v13 = vld [vmem:[#allocation2 + $0x40] sm:$0xff]  ;;  %v154_v14 = vld [vmem:[#allocation5 + $0x50] sm:$0xff]  ;;  %p410_p10 = scmp.ne.s32.totalorder %s245_s9, %s409_s10  ;;  %p415_p12 = scmp.lt.s32.totalorder %s409_s10, %s409_s10 }
  0x21   :  { %293 = vmatpush3.msra.mxu0 %v64_v2  ;;  %328 = vmatpush3.msra.mxu1 %v158_v7  ;;  %v57_v15 = vld [vmem:[#allocation2 + $0x38] sm:$0xff]  ;;  %v153_v16 = vld [vmem:[#allocation5 + $0x48] sm:$0xff]  ;;  %v56_v17 = vld [vmem:[#allocation2 + $0x30] sm:$0xff] }
  0x22   :  { %294 = vmatprep.subr.mxu0 %v439_v0  ;;  %329 = vmatprep.subr.mxu1 %v439_v0  ;;  %v55_v18 = vld [vmem:[#allocation2 + $0x28] sm:$0xff]  ;;  %v54_v19 = vld [vmem:[#allocation2 + $0x20] sm:$0xff]  ;;  %v53_v20 = vld [vmem:[#allocation2 + $0x18] sm:$0xff]  ;;  %p416_p13 = por %p415_p12, %p414_p11 }
  0x23   :  { %295 = vmatpush3.msra.mxu0 %v63_v3  ;;  %330 = vmatpush3.msra.mxu1 %v157_v8  ;;  %v52_v21 = vld [vmem:[#allocation2 + $0x10] sm:$0xff]  ;;  %v51_v22 = vld [vmem:[#allocation2 + $0x8] sm:$0xff]  ;;  %v50_v23 = vld [vmem:[#allocation2] sm:$0xff] }
  0x24   :  { %296 = vmatprep.subr.mxu0 %v439_v0  ;;  %331 = vmatprep.subr.mxu1 %v439_v0  ;;  %v49_v24 = vld [vmem:[%s524_s0] sm:$0xff]  ;;  %v151_v26 = vld [vmem:[#allocation5 + $0x38] sm:$0xff]  ;;  %v150_v27 = vld [vmem:[#allocation5 + $0x30] sm:$0xff]  ;;  %p417_p0 = pnand %p416_p13, %p410_p10 }
  0x25   :  { %297 = vmatpush3.msra.mxu0 %v62_v4  ;;  %332 = vmatpush3.msra.mxu1 %v156_v10  ;;  %v152_v25 = vld [vmem:[#allocation5 + $0x40] sm:$0xff]  ;;  %v149_v28 = vld [vmem:[#allocation5 + $0x28] sm:$0xff]  ;;  %v147_v30 = vld [vmem:[#allocation5 + $0x18] sm:$0xff] }
  0x26   :  { %298 = vmatprep.subr.mxu0 %v439_v0  ;;  %333 = vmatprep.subr.mxu1 %v439_v0  ;;  %v148_v29 = vld [vmem:[#allocation5 + $0x20] sm:$0xff]  ;;  %v146_v31 = vld [vmem:[#allocation5 + $0x10] sm:$0xff]  ;;  %v145_v32 = vld [vmem:[#allocation5 + $0x8] sm:$0xff] }
  0x27   :  { %299 = vmatpush3.msra.mxu0 %v61_v6  ;;  %334 = vmatpush3.msra.mxu1 %v155_v12  ;;  %v144_v33 = vld [vmem:[#allocation5] sm:$0xff] }
  0x28   :  { %300 = vmatprep.subr.mxu0 %v439_v0  ;;  %335 = vmatprep.subr.mxu1 %v439_v0  ;;  %v254_v34 = vld [vmem:[%s526_s2] ss:$0 sm:$0xff] }
  0x29   :  { %301 = vmatpush3.msra.mxu0 %v60_v9  ;;  %336 = vmatpush3.msra.mxu1 %v154_v14  ;;  %v255_v39 = vld [vmem:[%s528_s4] ss:$0 sm:$0xff] }
  0x2a   :  { %302 = vmatprep.subr.mxu0 %v439_v0  ;;  %337 = vmatprep.subr.mxu1 %v439_v0 }
  0x2b   :  { %303 = vmatpush3.msra.mxu0 %v59_v11  ;;  %338 = vmatpush3.msra.mxu1 %v153_v16 }
  0x2c   :  { %304 = vmatprep.subr.mxu0 %v439_v0  ;;  %339 = vmatprep.subr.mxu1 %v439_v0 }
  0x2d   :  { %305 = vmatpush3.msra.mxu0 %v58_v13  ;;  %340 = vmatpush3.msra.mxu1 %v152_v25 }
  0x2e   :  { %306 = vmatprep.subr.mxu0 %v439_v0  ;;  %341 = vmatprep.subr.mxu1 %v439_v0 }
  0x2f   :  { %307 = vmatpush3.msra.mxu0 %v57_v15  ;;  %342 = vmatpush3.msra.mxu1 %v151_v26 }
  0x30   :  { %308 = vmatprep.subr.mxu0 %v439_v0  ;;  %343 = vmatprep.subr.mxu1 %v439_v0 }
  0x31   :  { %309 = vmatpush3.msra.mxu0 %v56_v17  ;;  %344 = vmatpush3.msra.mxu1 %v150_v27 }
  0x32   :  { %310 = vmatprep.subr.mxu0 %v439_v0  ;;  %345 = vmatprep.subr.mxu1 %v439_v0 }
  0x33   :  { %311 = vmatpush3.msra.mxu0 %v55_v18  ;;  %346 = vmatpush3.msra.mxu1 %v149_v28 }
  0x34   :  { %312 = vmatprep.subr.mxu0 %v439_v0  ;;  %347 = vmatprep.subr.mxu1 %v439_v0 }
  0x35   :  { %313 = vmatpush3.msra.mxu0 %v54_v19  ;;  %348 = vmatpush3.msra.mxu1 %v148_v29 }
  0x36   :  { %314 = vmatprep.subr.mxu0 %v439_v0  ;;  %349 = vmatprep.subr.mxu1 %v439_v0 }
  0x37   :  { %315 = vmatpush3.msra.mxu0 %v53_v20  ;;  %350 = vmatpush3.msra.mxu1 %v147_v30 }
  0x38   :  { %316 = vmatprep.subr.mxu0 %v439_v0  ;;  %351 = vmatprep.subr.mxu1 %v439_v0 }
  0x39   :  { %317 = vmatpush3.msra.mxu0 %v52_v21  ;;  %352 = vmatpush3.msra.mxu1 %v146_v31 }
  0x3a   :  { %318 = vmatprep.subr.mxu0 %v439_v0  ;;  %353 = vmatprep.subr.mxu1 %v439_v0 }
  0x3b   :  { %319 = vmatpush3.msra.mxu0 %v51_v22  ;;  %354 = vmatpush3.msra.mxu1 %v145_v32 }
  0x3c   :  { %320 = vmatprep.subr.mxu0 %v439_v0  ;;  %355 = vmatprep.subr.mxu1 %v439_v0 }
  0x3d   :  { %321 = vmatpush3.msra.mxu0 %v50_v23  ;;  %356 = vmatpush3.msra.mxu1 %v144_v33 }
  0x3e   :  { %323 = vmatmul.mubr.f32.vlgmr.msra.gmra.mxu0 %v49_v24 }
  0xfe   :  { %v139_v35 = vpop.f32.mrf.mxu0 }
  0xff   :  { %v140_v36 = vadd.f32 %v254_v34, %v139_v35 }
 0x100   :  { %v324_v37 = vpop.f32.mrf.mxu0 }
 0x101   :  { %367 = vtanh.f32 %v140_v36 }
 0x10e   :  { %v368_v38 = vpop.eup %367 }
 0x10f   :  { %358 = vmatmul.mubr.f32.vlgmr.msra.gmra.mxu1 %v368_v38 }
 0x1cf   :  { %v233_v40 = vpop.f32.mrf.mxu1 }
 0x1d0   :  { %v234_v41 = vadd.f32 %v255_v39, %v233_v40 }
 0x1d1   :  { %v359_v42 = vpop.f32.mrf.mxu1 }
 0x1d2   :  { %237 = vst [vmem:[#allocation7] sm:$0xff] %v234_v41 }
 0x1d3   :  { %420 = shalt.err (!%p417_p0)
}
 0x1d4   :  { %247 = dma.vmem_to_hbm [thread:$0]  %s245_s9, 128, %s529_s5, [#allocation4]  }
 0x1d5   :  { %433 = dma.done.wait [#allocation4], 128  }
 0x1d6   :  { %434 = vsyncadd [#allocation4], 4294967168 }
 0x1d7   :  { %251 = vsyncpa [#allocation3], 1 }
 0x1d8   :  { %252 = vsyncpa [#allocation6], 1 }
 0x1d9   :  { %253 = vsyncpa [#allocation4], 1 }

</bundles_post_ra>
